<compile_context>
chip_gen: v7x
topology: tpu7x:2x2x1
jax: 0.10.0
libtpu: 0.0.40
codegen_flags: <defaults>
</compile_context>

<pallas_src>
import jax
import jax.numpy as jnp
from jax import lax
from jax.experimental import pallas as pl
from jax.experimental.pallas import tpu as pltpu


def fingerspelling_kernel(x_ref,        # (T*TB, D)  bf16, time-major rows: row t*TB + b
                          wih_f_ref,    # (D, 4H)    bf16
                          whh_f_ref,    # (H, 4H)    bf16
                          b_f_ref,      # (1, 4H)    f32   (b_ih + b_hh fused)
                          wih_b_ref,    # (D, 4H)    bf16
                          b_b_ref,      # (1, 4H)    f32
                          w1_f_ref,     # (H, 128)   bf16  (fc1 rows hit by h_fwd)
                          w1_b_ref,     # (H, 128)   bf16  (fc1 rows hit by h_bwd)
                          b1_ref,       # (1, 128)   f32
                          w2_ref,       # (128, 128) bf16  (fc2, columns zero-padded to 128)
                          b2_ref,       # (1, 128)   f32
                          out_ref):     # (TB, 128)  f32   lane-dense output slab
    H = whh_f_ref.shape[0]
    TB = out_ref.shape[0]
    T = x_ref.shape[0] // TB

    x2d = x_ref[...]                                            # (T*TB, D) bf16

    # ---- hoisted input projection: ONE big matmul, off the serial chain ----
    xp = (jnp.dot(x2d, wih_f_ref[...], preferred_element_type=jnp.float32)
          + b_f_ref[...])                                       # (T*TB, 4H) f32

    whh_f = whh_f_ref[...]                                      # bf16, VMEM/vreg resident

    h = jnp.zeros((TB, H), jnp.float32)
    c = jnp.zeros((TB, H), jnp.float32)

    # ---- forward recurrence, fully unrolled (T small & static) -------------
    for t in range(T):
        xp_t = xp[t * TB:(t + 1) * TB, :]                       # static (TB, 4H) vreg slice
        gates = xp_t + jnp.dot(h.astype(jnp.bfloat16), whh_f,
                               preferred_element_type=jnp.float32)
        s = jax.nn.sigmoid(gates)                               # full-width EUP op
        tg = jnp.tanh(gates)                                    # full-width EUP op
        i = s[:, 0 * H:1 * H]                                   # PyTorch gate order i,f,g,o
        f = s[:, 1 * H:2 * H]
        g = tg[:, 2 * H:3 * H]
        o = s[:, 3 * H:4 * H]
        c = f * c + i * g
        h = o * jnp.tanh(c)
    h_fwd = h

    # ---- backward direction: out[:, -1, H:] is ONE reverse step from zero
    # state, so the h0@whh_b matmul and the f*c0 term are exactly zero. ------
    x_last = x2d[(T - 1) * TB:T * TB, :]
    gates_b = (jnp.dot(x_last, wih_b_ref[...], preferred_element_type=jnp.float32)
               + b_b_ref[...])
    sb = jax.nn.sigmoid(gates_b)
    tb = jnp.tanh(gates_b)
    i_b = sb[:, 0 * H:1 * H]
    g_b = tb[:, 2 * H:3 * H]
    o_b = sb[:, 3 * H:4 * H]
    h_bwd = o_b * jnp.tanh(i_b * g_b)

    # ---- fc1 as two accumulated matmuls (no lane concat) + ReLU + fc2 ------
    z = (jnp.dot(h_fwd.astype(jnp.bfloat16), w1_f_ref[...],
                 preferred_element_type=jnp.float32)
         + jnp.dot(h_bwd.astype(jnp.bfloat16), w1_b_ref[...],
                   preferred_element_type=jnp.float32)
         + b1_ref[...])
    z = jnp.maximum(z, 0.0)
    out_ref[...] = (jnp.dot(z.astype(jnp.bfloat16), w2_ref[...],
                            preferred_element_type=jnp.float32)
                    + b2_ref[...])                              # lane-dense (TB, 128) store


@jax.jit
def fingerspelling_forward(x_btd, params):
    """x_btd: (B, T, D) float32 (PyTorch batch_first). Returns (B, num_classes) f32."""
    B, T, D = x_btd.shape
    H = params["whh_f"].shape[0]
    C = params["b2"].shape[-1]

    # pad the batch to a multiple of 8 sublanes
    TB = ((B + 7) // 8) * 8
    x_pad = jnp.pad(x_btd, ((0, TB - B), (0, 0), (0, 0))) if TB != B else x_btd

    # time-major, flattened to 2D so the input projection is one matmul
    x2d = jnp.transpose(x_pad, (1, 0, 2)).reshape(T * TB, D).astype(jnp.bfloat16)

    # lane-dense output slab: pad fc2 columns to 128 with zeros
    CP = 128
    w2p = jnp.zeros((128, CP), jnp.float32).at[:, :C].set(params["w2"]).astype(jnp.bfloat16)
    b2p = jnp.zeros((1, CP), jnp.float32).at[:, :C].set(params["b2"])

    bf16 = lambda a: a.astype(jnp.bfloat16)
    args = (x2d,
            bf16(params["wih_f"]), bf16(params["whh_f"]), params["b_f"],
            bf16(params["wih_b"]), params["b_b"],
            bf16(params["w1"][:H, :]), bf16(params["w1"][H:, :]), params["b1"],
            w2p, b2p)

    vmem = pl.BlockSpec(memory_space=pltpu.MemorySpace.VMEM)
    out_padded = pl.pallas_call(
        fingerspelling_kernel,
        out_shape=jax.ShapeDtypeStruct((TB, CP), jnp.float32),
        in_specs=[vmem] * len(args),
        out_specs=vmem,
    )(*args)
    return out_padded[:B, :C]


# ----------------------------- pure-JAX reference ----------------------------
def reference_forward(x_btd, params):
    """Standard (unfused) BiLSTM formulation with the same bf16-weight / f32-accum math."""
    B, T, D = x_btd.shape
    H = params["whh_f"].shape[0]
    bf16 = lambda a: a.astype(jnp.bfloat16)

    def cell(x_t, h, c, wih, whh, b):
        gates = (jnp.dot(x_t, bf16(wih), preferred_element_type=jnp.float32)
                 + jnp.dot(h.astype(jnp.bfloat16), bf16(whh),
                           preferred_element_type=jnp.float32)
                 + b)
        i = jax.nn.sigmoid(gates[:, 0 * H:1 * H])
        f = jax.nn.sigmoid(gates[:, 1 * H:2 * H])
        g = jnp.tanh(gates[:, 2 * H:3 * H])
        o = jax.nn.sigmoid(gates[:, 3 * H:4 * H])
        c_new = f * c + i * g
        return o * jnp.tanh(c_new), c_new

    h0 = jnp.zeros((B, H), jnp.float32)
    x_tbd = jnp.transpose(x_btd, (1, 0, 2)).astype(jnp.bfloat16)

    def run_dir(seq, wih, whh, b):
        def body(carry, x_t):
            h, c = carry
            h, c = cell(x_t, h, c, wih, whh, b)
            return (h, c), h
        _, hs = lax.scan(body, (h0, h0), seq)
        return hs                                                # (T, B, H)

    hs_f = run_dir(x_tbd, params["wih_f"], params["whh_f"], params["b_f"])
    hs_b = run_dir(x_tbd[::-1], params["wih_b"], params["whh_b"], params["b_b"])[::-1]
    feat = jnp.concatenate([hs_f[-1], hs_b[-1]], axis=-1)        # out[:, -1, :]
    z = (jnp.dot(feat.astype(jnp.bfloat16), bf16(params["w1"]),
                 preferred_element_type=jnp.float32) + params["b1"])
    z = jnp.maximum(z, 0.0)
    return (jnp.dot(z.astype(jnp.bfloat16), bf16(params["w2"]),
                    preferred_element_type=jnp.float32) + params["b2"])


def init_params(key, input_size, hidden_size, num_classes):
    H = hidden_size
    ks = jax.random.split(key, 12)
    s_lstm = 1.0 / jnp.sqrt(H)
    s_fc1 = 1.0 / jnp.sqrt(2 * H)
    s_fc2 = 1.0 / jnp.sqrt(128)
    u = lambda k, shape, s: jax.random.uniform(k, shape, jnp.float32, -s, s)
    return {
        # LSTM weights stored pre-transposed: (in, 4H); bias = b_ih + b_hh fused -> (1, 4H)
        "wih_f": u(ks[0], (input_size, 4 * H), s_lstm),
        "whh_f": u(ks[1], (H, 4 * H), s_lstm),
        "b_f":   u(ks[2], (1, 4 * H), s_lstm) + u(ks[3], (1, 4 * H), s_lstm),
        "wih_b": u(ks[4], (input_size, 4 * H), s_lstm),
        "whh_b": u(ks[5], (H, 4 * H), s_lstm),   # kept for the reference; unused by the kernel
        "b_b":   u(ks[6], (1, 4 * H), s_lstm) + u(ks[7], (1, 4 * H), s_lstm),
        # fc1: (2H, 128), fc2: (128, C), pre-transposed
        "w1": u(ks[8], (2 * H, 128), s_fc1),
        "b1": u(ks[9], (1, 128), s_fc1),
        "w2": u(ks[10], (128, num_classes), s_fc2),
        "b2": u(ks[11], (1, num_classes), s_fc2),
    }


if __name__ == "__main__":
    B, T, D = 2, 8, 16          # batch, seq len, input_size
    H, C = 32, 10               # hidden_size (4H = 128 = one lane width), num_classes

    key = jax.random.PRNGKey(0)
    kx, kp = jax.random.split(key)
    x = jax.random.normal(kx, (B, T, D), jnp.float32)
    params = init_params(kp, D, H, C)

    out = jax.block_until_ready(fingerspelling_forward(x, params))
    ref = jax.block_until_ready(reference_forward(x, params))

    assert out.shape == (B, C)
    assert jnp.allclose(out, ref, atol=1e-3, rtol=1e-3), "mismatch vs pure-JAX reference"

    print("KERNEL_OK")
</pallas_src>

<mosaic_0001>
module attributes {stable_mosaic.version = 11 : i64} {
  func.func @fingerspelling_kernel(%arg0: memref<64x16xbf16, #tpu.memory_space<vmem>>, %arg1: memref<16x128xbf16, #tpu.memory_space<vmem>>, %arg2: memref<32x128xbf16, #tpu.memory_space<vmem>>, %arg3: memref<1x128xf32, #tpu.memory_space<vmem>>, %arg4: memref<16x128xbf16, #tpu.memory_space<vmem>>, %arg5: memref<1x128xf32, #tpu.memory_space<vmem>>, %arg6: memref<32x128xbf16, #tpu.memory_space<vmem>>, %arg7: memref<32x128xbf16, #tpu.memory_space<vmem>>, %arg8: memref<1x128xf32, #tpu.memory_space<vmem>>, %arg9: memref<128x128xbf16, #tpu.memory_space<vmem>>, %arg10: memref<1x128xf32, #tpu.memory_space<vmem>>, %arg11: memref<8x128xf32, #tpu.memory_space<vmem>>) attributes {dimension_semantics = [], scalar_prefetch = 0 : i64, scratch_operands = 0 : i64, tpu.core_type = #tpu.core_type<tc>} {
    %c0 = arith.constant 0 : index
    %c0_0 = arith.constant 0 : index
    %0 = vector.load %arg0[%c0, %c0_0] : memref<64x16xbf16, #tpu.memory_space<vmem>>, vector<64x16xbf16>
    %c0_1 = arith.constant 0 : index
    %c0_2 = arith.constant 0 : index
    %1 = vector.load %arg1[%c0_1, %c0_2] : memref<16x128xbf16, #tpu.memory_space<vmem>>, vector<16x128xbf16>
    %cst = arith.constant dense<0.000000e+00> : vector<64x128xf32>
    %2 = tpu.matmul %0, %1, %cst {dimension_numbers = #tpu.dot_dimension_numbers<[1], [0], [0], [1], [0, 0, 1, 1], [], []>} : vector<64x16xbf16>, vector<16x128xbf16>, vector<64x128xf32> -> vector<64x128xf32>
    %c0_3 = arith.constant 0 : index
    %c0_4 = arith.constant 0 : index
    %3 = vector.load %arg3[%c0_3, %c0_4] : memref<1x128xf32, #tpu.memory_space<vmem>>, vector<1x128xf32>
    %4 = vector.broadcast %3 : vector<1x128xf32> to vector<64x128xf32>
    %5 = arith.addf %2, %4 : vector<64x128xf32>
    %c0_5 = arith.constant 0 : index
    %c0_6 = arith.constant 0 : index
    %6 = vector.load %arg2[%c0_5, %c0_6] : memref<32x128xbf16, #tpu.memory_space<vmem>>, vector<32x128xbf16>
    %cst_7 = arith.constant 0.000000e+00 : f32
    %7 = vector.broadcast %cst_7 : f32 to vector<8x32xf32>
    %cst_8 = arith.constant 0.000000e+00 : f32
    %8 = vector.broadcast %cst_8 : f32 to vector<8x32xf32>
    %9 = vector.extract_strided_slice %5 {offsets = [0, 0], sizes = [8, 128], strides = [1, 1]} : vector<64x128xf32> to vector<8x128xf32>
    %10 = arith.truncf %7 : vector<8x32xf32> to vector<8x32xbf16>
    %cst_9 = arith.constant dense<0.000000e+00> : vector<8x128xf32>
    %11 = tpu.matmul %10, %6, %cst_9 {dimension_numbers = #tpu.dot_dimension_numbers<[1], [0], [0], [1], [0, 0, 1, 1], [], []>} : vector<8x32xbf16>, vector<32x128xbf16>, vector<8x128xf32> -> vector<8x128xf32>
    %12 = arith.addf %9, %11 : vector<8x128xf32>
    %13 = arith.negf %12 : vector<8x128xf32>
    %14 = math.exp %13 : vector<8x128xf32>
    %cst_10 = arith.constant 1.000000e+00 : f32
    %15 = vector.broadcast %cst_10 : f32 to vector<8x128xf32>
    %16 = arith.addf %15, %14 : vector<8x128xf32>
    %17 = arith.divf %15, %16 : vector<8x128xf32>
    %18 = math.tanh %12 : vector<8x128xf32>
    %19 = vector.extract_strided_slice %17 {offsets = [0, 0], sizes = [8, 32], strides = [1, 1]} : vector<8x128xf32> to vector<8x32xf32>
    %20 = vector.extract_strided_slice %17 {offsets = [0, 32], sizes = [8, 32], strides = [1, 1]} : vector<8x128xf32> to vector<8x32xf32>
    %21 = vector.extract_strided_slice %18 {offsets = [0, 64], sizes = [8, 32], strides = [1, 1]} : vector<8x128xf32> to vector<8x32xf32>
    %22 = vector.extract_strided_slice %17 {offsets = [0, 96], sizes = [8, 32], strides = [1, 1]} : vector<8x128xf32> to vector<8x32xf32>
    %23 = arith.mulf %20, %8 : vector<8x32xf32>
    %24 = arith.mulf %19, %21 : vector<8x32xf32>
    %25 = arith.addf %23, %24 : vector<8x32xf32>
    %26 = math.tanh %25 : vector<8x32xf32>
    %27 = arith.mulf %22, %26 : vector<8x32xf32>
    %28 = vector.extract_strided_slice %5 {offsets = [8, 0], sizes = [8, 128], strides = [1, 1]} : vector<64x128xf32> to vector<8x128xf32>
    %29 = arith.truncf %27 : vector<8x32xf32> to vector<8x32xbf16>
    %cst_11 = arith.constant dense<0.000000e+00> : vector<8x128xf32>
    %30 = tpu.matmul %29, %6, %cst_11 {dimension_numbers = #tpu.dot_dimension_numbers<[1], [0], [0], [1], [0, 0, 1, 1], [], []>} : vector<8x32xbf16>, vector<32x128xbf16>, vector<8x128xf32> -> vector<8x128xf32>
    %31 = arith.addf %28, %30 : vector<8x128xf32>
    %32 = arith.negf %31 : vector<8x128xf32>
    %33 = math.exp %32 : vector<8x128xf32>
    %cst_12 = arith.constant 1.000000e+00 : f32
    %34 = vector.broadcast %cst_12 : f32 to vector<8x128xf32>
    %35 = arith.addf %34, %33 : vector<8x128xf32>
    %36 = arith.divf %34, %35 : vector<8x128xf32>
    %37 = math.tanh %31 : vector<8x128xf32>
    %38 = vector.extract_strided_slice %36 {offsets = [0, 0], sizes = [8, 32], strides = [1, 1]} : vector<8x128xf32> to vector<8x32xf32>
    %39 = vector.extract_strided_slice %36 {offsets = [0, 32], sizes = [8, 32], strides = [1, 1]} : vector<8x128xf32> to vector<8x32xf32>
    %40 = vector.extract_strided_slice %37 {offsets = [0, 64], sizes = [8, 32], strides = [1, 1]} : vector<8x128xf32> to vector<8x32xf32>
    %41 = vector.extract_strided_slice %36 {offsets = [0, 96], sizes = [8, 32], strides = [1, 1]} : vector<8x128xf32> to vector<8x32xf32>
    %42 = arith.mulf %39, %25 : vector<8x32xf32>
    %43 = arith.mulf %38, %40 : vector<8x32xf32>
    %44 = arith.addf %42, %43 : vector<8x32xf32>
    %45 = math.tanh %44 : vector<8x32xf32>
    %46 = arith.mulf %41, %45 : vector<8x32xf32>
    %47 = vector.extract_strided_slice %5 {offsets = [16, 0], sizes = [8, 128], strides = [1, 1]} : vector<64x128xf32> to vector<8x128xf32>
    %48 = arith.truncf %46 : vector<8x32xf32> to vector<8x32xbf16>
    %cst_13 = arith.constant dense<0.000000e+00> : vector<8x128xf32>
    %49 = tpu.matmul %48, %6, %cst_13 {dimension_numbers = #tpu.dot_dimension_numbers<[1], [0], [0], [1], [0, 0, 1, 1], [], []>} : vector<8x32xbf16>, vector<32x128xbf16>, vector<8x128xf32> -> vector<8x128xf32>
    %50 = arith.addf %47, %49 : vector<8x128xf32>
    %51 = arith.negf %50 : vector<8x128xf32>
    %52 = math.exp %51 : vector<8x128xf32>
    %cst_14 = arith.constant 1.000000e+00 : f32
    %53 = vector.broadcast %cst_14 : f32 to vector<8x128xf32>
    %54 = arith.addf %53, %52 : vector<8x128xf32>
    %55 = arith.divf %53, %54 : vector<8x128xf32>
    %56 = math.tanh %50 : vector<8x128xf32>
    %57 = vector.extract_strided_slice %55 {offsets = [0, 0], sizes = [8, 32], strides = [1, 1]} : vector<8x128xf32> to vector<8x32xf32>
    %58 = vector.extract_strided_slice %55 {offsets = [0, 32], sizes = [8, 32], strides = [1, 1]} : vector<8x128xf32> to vector<8x32xf32>
    %59 = vector.extract_strided_slice %56 {offsets = [0, 64], sizes = [8, 32], strides = [1, 1]} : vector<8x128xf32> to vector<8x32xf32>
    %60 = vector.extract_strided_slice %55 {offsets = [0, 96], sizes = [8, 32], strides = [1, 1]} : vector<8x128xf32> to vector<8x32xf32>
    %61 = arith.mulf %58, %44 : vector<8x32xf32>
    %62 = arith.mulf %57, %59 : vector<8x32xf32>
    %63 = arith.addf %61, %62 : vector<8x32xf32>
    %64 = math.tanh %63 : vector<8x32xf32>
    %65 = arith.mulf %60, %64 : vector<8x32xf32>
    %66 = vector.extract_strided_slice %5 {offsets = [24, 0], sizes = [8, 128], strides = [1, 1]} : vector<64x128xf32> to vector<8x128xf32>
    %67 = arith.truncf %65 : vector<8x32xf32> to vector<8x32xbf16>
    %cst_15 = arith.constant dense<0.000000e+00> : vector<8x128xf32>
    %68 = tpu.matmul %67, %6, %cst_15 {dimension_numbers = #tpu.dot_dimension_numbers<[1], [0], [0], [1], [0, 0, 1, 1], [], []>} : vector<8x32xbf16>, vector<32x128xbf16>, vector<8x128xf32> -> vector<8x128xf32>
    %69 = arith.addf %66, %68 : vector<8x128xf32>
    %70 = arith.negf %69 : vector<8x128xf32>
    %71 = math.exp %70 : vector<8x128xf32>
    %cst_16 = arith.constant 1.000000e+00 : f32
    %72 = vector.broadcast %cst_16 : f32 to vector<8x128xf32>
    %73 = arith.addf %72, %71 : vector<8x128xf32>
    %74 = arith.divf %72, %73 : vector<8x128xf32>
    %75 = math.tanh %69 : vector<8x128xf32>
    %76 = vector.extract_strided_slice %74 {offsets = [0, 0], sizes = [8, 32], strides = [1, 1]} : vector<8x128xf32> to vector<8x32xf32>
    %77 = vector.extract_strided_slice %74 {offsets = [0, 32], sizes = [8, 32], strides = [1, 1]} : vector<8x128xf32> to vector<8x32xf32>
    %78 = vector.extract_strided_slice %75 {offsets = [0, 64], sizes = [8, 32], strides = [1, 1]} : vector<8x128xf32> to vector<8x32xf32>
    %79 = vector.extract_strided_slice %74 {offsets = [0, 96], sizes = [8, 32], strides = [1, 1]} : vector<8x128xf32> to vector<8x32xf32>
    %80 = arith.mulf %77, %63 : vector<8x32xf32>
    %81 = arith.mulf %76, %78 : vector<8x32xf32>
    %82 = arith.addf %80, %81 : vector<8x32xf32>
    %83 = math.tanh %82 : vector<8x32xf32>
    %84 = arith.mulf %79, %83 : vector<8x32xf32>
    %85 = vector.extract_strided_slice %5 {offsets = [32, 0], sizes = [8, 128], strides = [1, 1]} : vector<64x128xf32> to vector<8x128xf32>
    %86 = arith.truncf %84 : vector<8x32xf32> to vector<8x32xbf16>
    %cst_17 = arith.constant dense<0.000000e+00> : vector<8x128xf32>
    %87 = tpu.matmul %86, %6, %cst_17 {dimension_numbers = #tpu.dot_dimension_numbers<[1], [0], [0], [1], [0, 0, 1, 1], [], []>} : vector<8x32xbf16>, vector<32x128xbf16>, vector<8x128xf32> -> vector<8x128xf32>
    %88 = arith.addf %85, %87 : vector<8x128xf32>
    %89 = arith.negf %88 : vector<8x128xf32>
    %90 = math.exp %89 : vector<8x128xf32>
    %cst_18 = arith.constant 1.000000e+00 : f32
    %91 = vector.broadcast %cst_18 : f32 to vector<8x128xf32>
    %92 = arith.addf %91, %90 : vector<8x128xf32>
    %93 = arith.divf %91, %92 : vector<8x128xf32>
    %94 = math.tanh %88 : vector<8x128xf32>
    %95 = vector.extract_strided_slice %93 {offsets = [0, 0], sizes = [8, 32], strides = [1, 1]} : vector<8x128xf32> to vector<8x32xf32>
    %96 = vector.extract_strided_slice %93 {offsets = [0, 32], sizes = [8, 32], strides = [1, 1]} : vector<8x128xf32> to vector<8x32xf32>
    %97 = vector.extract_strided_slice %94 {offsets = [0, 64], sizes = [8, 32], strides = [1, 1]} : vector<8x128xf32> to vector<8x32xf32>
    %98 = vector.extract_strided_slice %93 {offsets = [0, 96], sizes = [8, 32], strides = [1, 1]} : vector<8x128xf32> to vector<8x32xf32>
    %99 = arith.mulf %96, %82 : vector<8x32xf32>
    %100 = arith.mulf %95, %97 : vector<8x32xf32>
    %101 = arith.addf %99, %100 : vector<8x32xf32>
    %102 = math.tanh %101 : vector<8x32xf32>
    %103 = arith.mulf %98, %102 : vector<8x32xf32>
    %104 = vector.extract_strided_slice %5 {offsets = [40, 0], sizes = [8, 128], strides = [1, 1]} : vector<64x128xf32> to vector<8x128xf32>
    %105 = arith.truncf %103 : vector<8x32xf32> to vector<8x32xbf16>
    %cst_19 = arith.constant dense<0.000000e+00> : vector<8x128xf32>
    %106 = tpu.matmul %105, %6, %cst_19 {dimension_numbers = #tpu.dot_dimension_numbers<[1], [0], [0], [1], [0, 0, 1, 1], [], []>} : vector<8x32xbf16>, vector<32x128xbf16>, vector<8x128xf32> -> vector<8x128xf32>
    %107 = arith.addf %104, %106 : vector<8x128xf32>
    %108 = arith.negf %107 : vector<8x128xf32>
    %109 = math.exp %108 : vector<8x128xf32>
    %cst_20 = arith.constant 1.000000e+00 : f32
    %110 = vector.broadcast %cst_20 : f32 to vector<8x128xf32>
    %111 = arith.addf %110, %109 : vector<8x128xf32>
    %112 = arith.divf %110, %111 : vector<8x128xf32>
    %113 = math.tanh %107 : vector<8x128xf32>
    %114 = vector.extract_strided_slice %112 {offsets = [0, 0], sizes = [8, 32], strides = [1, 1]} : vector<8x128xf32> to vector<8x32xf32>
    %115 = vector.extract_strided_slice %112 {offsets = [0, 32], sizes = [8, 32], strides = [1, 1]} : vector<8x128xf32> to vector<8x32xf32>
    %116 = vector.extract_strided_slice %113 {offsets = [0, 64], sizes = [8, 32], strides = [1, 1]} : vector<8x128xf32> to vector<8x32xf32>
    %117 = vector.extract_strided_slice %112 {offsets = [0, 96], sizes = [8, 32], strides = [1, 1]} : vector<8x128xf32> to vector<8x32xf32>
    %118 = arith.mulf %115, %101 : vector<8x32xf32>
    %119 = arith.mulf %114, %116 : vector<8x32xf32>
    %120 = arith.addf %118, %119 : vector<8x32xf32>
    %121 = math.tanh %120 : vector<8x32xf32>
    %122 = arith.mulf %117, %121 : vector<8x32xf32>
    %123 = vector.extract_strided_slice %5 {offsets = [48, 0], sizes = [8, 128], strides = [1, 1]} : vector<64x128xf32> to vector<8x128xf32>
    %124 = arith.truncf %122 : vector<8x32xf32> to vector<8x32xbf16>
    %cst_21 = arith.constant dense<0.000000e+00> : vector<8x128xf32>
    %125 = tpu.matmul %124, %6, %cst_21 {dimension_numbers = #tpu.dot_dimension_numbers<[1], [0], [0], [1], [0, 0, 1, 1], [], []>} : vector<8x32xbf16>, vector<32x128xbf16>, vector<8x128xf32> -> vector<8x128xf32>
    %126 = arith.addf %123, %125 : vector<8x128xf32>
    %127 = arith.negf %126 : vector<8x128xf32>
    %128 = math.exp %127 : vector<8x128xf32>
    %cst_22 = arith.constant 1.000000e+00 : f32
    %129 = vector.broadcast %cst_22 : f32 to vector<8x128xf32>
    %130 = arith.addf %129, %128 : vector<8x128xf32>
    %131 = arith.divf %129, %130 : vector<8x128xf32>
    %132 = math.tanh %126 : vector<8x128xf32>
    %133 = vector.extract_strided_slice %131 {offsets = [0, 0], sizes = [8, 32], strides = [1, 1]} : vector<8x128xf32> to vector<8x32xf32>
    %134 = vector.extract_strided_slice %131 {offsets = [0, 32], sizes = [8, 32], strides = [1, 1]} : vector<8x128xf32> to vector<8x32xf32>
    %135 = vector.extract_strided_slice %132 {offsets = [0, 64], sizes = [8, 32], strides = [1, 1]} : vector<8x128xf32> to vector<8x32xf32>
    %136 = vector.extract_strided_slice %131 {offsets = [0, 96], sizes = [8, 32], strides = [1, 1]} : vector<8x128xf32> to vector<8x32xf32>
    %137 = arith.mulf %134, %120 : vector<8x32xf32>
    %138 = arith.mulf %133, %135 : vector<8x32xf32>
    %139 = arith.addf %137, %138 : vector<8x32xf32>
    %140 = math.tanh %139 : vector<8x32xf32>
    %141 = arith.mulf %136, %140 : vector<8x32xf32>
    %142 = vector.extract_strided_slice %5 {offsets = [56, 0], sizes = [8, 128], strides = [1, 1]} : vector<64x128xf32> to vector<8x128xf32>
    %143 = arith.truncf %141 : vector<8x32xf32> to vector<8x32xbf16>
    %cst_23 = arith.constant dense<0.000000e+00> : vector<8x128xf32>
    %144 = tpu.matmul %143, %6, %cst_23 {dimension_numbers = #tpu.dot_dimension_numbers<[1], [0], [0], [1], [0, 0, 1, 1], [], []>} : vector<8x32xbf16>, vector<32x128xbf16>, vector<8x128xf32> -> vector<8x128xf32>
    %145 = arith.addf %142, %144 : vector<8x128xf32>
    %146 = arith.negf %145 : vector<8x128xf32>
    %147 = math.exp %146 : vector<8x128xf32>
    %cst_24 = arith.constant 1.000000e+00 : f32
    %148 = vector.broadcast %cst_24 : f32 to vector<8x128xf32>
    %149 = arith.addf %148, %147 : vector<8x128xf32>
    %150 = arith.divf %148, %149 : vector<8x128xf32>
    %151 = math.tanh %145 : vector<8x128xf32>
    %152 = vector.extract_strided_slice %150 {offsets = [0, 0], sizes = [8, 32], strides = [1, 1]} : vector<8x128xf32> to vector<8x32xf32>
    %153 = vector.extract_strided_slice %150 {offsets = [0, 32], sizes = [8, 32], strides = [1, 1]} : vector<8x128xf32> to vector<8x32xf32>
    %154 = vector.extract_strided_slice %151 {offsets = [0, 64], sizes = [8, 32], strides = [1, 1]} : vector<8x128xf32> to vector<8x32xf32>
    %155 = vector.extract_strided_slice %150 {offsets = [0, 96], sizes = [8, 32], strides = [1, 1]} : vector<8x128xf32> to vector<8x32xf32>
    %156 = arith.mulf %153, %139 : vector<8x32xf32>
    %157 = arith.mulf %152, %154 : vector<8x32xf32>
    %158 = arith.addf %156, %157 : vector<8x32xf32>
    %159 = math.tanh %158 : vector<8x32xf32>
    %160 = arith.mulf %155, %159 : vector<8x32xf32>
    %161 = vector.extract_strided_slice %0 {offsets = [56, 0], sizes = [8, 16], strides = [1, 1]} : vector<64x16xbf16> to vector<8x16xbf16>
    %c0_25 = arith.constant 0 : index
    %c0_26 = arith.constant 0 : index
    %162 = vector.load %arg4[%c0_25, %c0_26] : memref<16x128xbf16, #tpu.memory_space<vmem>>, vector<16x128xbf16>
    %cst_27 = arith.constant dense<0.000000e+00> : vector<8x128xf32>
    %163 = tpu.matmul %161, %162, %cst_27 {dimension_numbers = #tpu.dot_dimension_numbers<[1], [0], [0], [1], [0, 0, 1, 1], [], []>} : vector<8x16xbf16>, vector<16x128xbf16>, vector<8x128xf32> -> vector<8x128xf32>
    %c0_28 = arith.constant 0 : index
    %c0_29 = arith.constant 0 : index
    %164 = vector.load %arg5[%c0_28, %c0_29] : memref<1x128xf32, #tpu.memory_space<vmem>>, vector<1x128xf32>
    %165 = vector.broadcast %164 : vector<1x128xf32> to vector<8x128xf32>
    %166 = arith.addf %163, %165 : vector<8x128xf32>
    %167 = arith.negf %166 : vector<8x128xf32>
    %168 = math.exp %167 : vector<8x128xf32>
    %cst_30 = arith.constant 1.000000e+00 : f32
    %169 = vector.broadcast %cst_30 : f32 to vector<8x128xf32>
    %170 = arith.addf %169, %168 : vector<8x128xf32>
    %171 = arith.divf %169, %170 : vector<8x128xf32>
    %172 = math.tanh %166 : vector<8x128xf32>
    %173 = vector.extract_strided_slice %171 {offsets = [0, 0], sizes = [8, 32], strides = [1, 1]} : vector<8x128xf32> to vector<8x32xf32>
    %174 = vector.extract_strided_slice %172 {offsets = [0, 64], sizes = [8, 32], strides = [1, 1]} : vector<8x128xf32> to vector<8x32xf32>
    %175 = vector.extract_strided_slice %171 {offsets = [0, 96], sizes = [8, 32], strides = [1, 1]} : vector<8x128xf32> to vector<8x32xf32>
    %176 = arith.mulf %173, %174 : vector<8x32xf32>
    %177 = math.tanh %176 : vector<8x32xf32>
    %178 = arith.mulf %175, %177 : vector<8x32xf32>
    %179 = arith.truncf %160 : vector<8x32xf32> to vector<8x32xbf16>
    %c0_31 = arith.constant 0 : index
    %c0_32 = arith.constant 0 : index
    %180 = vector.load %arg6[%c0_31, %c0_32] : memref<32x128xbf16, #tpu.memory_space<vmem>>, vector<32x128xbf16>
    %cst_33 = arith.constant dense<0.000000e+00> : vector<8x128xf32>
    %181 = tpu.matmul %179, %180, %cst_33 {dimension_numbers = #tpu.dot_dimension_numbers<[1], [0], [0], [1], [0, 0, 1, 1], [], []>} : vector<8x32xbf16>, vector<32x128xbf16>, vector<8x128xf32> -> vector<8x128xf32>
    %182 = arith.truncf %178 : vector<8x32xf32> to vector<8x32xbf16>
    %c0_34 = arith.constant 0 : index
    %c0_35 = arith.constant 0 : index
    %183 = vector.load %arg7[%c0_34, %c0_35] : memref<32x128xbf16, #tpu.memory_space<vmem>>, vector<32x128xbf16>
    %cst_36 = arith.constant dense<0.000000e+00> : vector<8x128xf32>
    %184 = tpu.matmul %182, %183, %cst_36 {dimension_numbers = #tpu.dot_dimension_numbers<[1], [0], [0], [1], [0, 0, 1, 1], [], []>} : vector<8x32xbf16>, vector<32x128xbf16>, vector<8x128xf32> -> vector<8x128xf32>
    %185 = arith.addf %181, %184 : vector<8x128xf32>
    %c0_37 = arith.constant 0 : index
    %c0_38 = arith.constant 0 : index
    %186 = vector.load %arg8[%c0_37, %c0_38] : memref<1x128xf32, #tpu.memory_space<vmem>>, vector<1x128xf32>
    %187 = vector.broadcast %186 : vector<1x128xf32> to vector<8x128xf32>
    %188 = arith.addf %185, %187 : vector<8x128xf32>
    %cst_39 = arith.constant 0.000000e+00 : f32
    %189 = vector.broadcast %cst_39 : f32 to vector<8x128xf32>
    %190 = arith.maximumf %188, %189 : vector<8x128xf32>
    %191 = arith.truncf %190 : vector<8x128xf32> to vector<8x128xbf16>
    %c0_40 = arith.constant 0 : index
    %c0_41 = arith.constant 0 : index
    %192 = vector.load %arg9[%c0_40, %c0_41] : memref<128x128xbf16, #tpu.memory_space<vmem>>, vector<128x128xbf16>
    %cst_42 = arith.constant dense<0.000000e+00> : vector<8x128xf32>
    %193 = tpu.matmul %191, %192, %cst_42 {dimension_numbers = #tpu.dot_dimension_numbers<[1], [0], [0], [1], [0, 0, 1, 1], [], []>} : vector<8x128xbf16>, vector<128x128xbf16>, vector<8x128xf32> -> vector<8x128xf32>
    %c0_43 = arith.constant 0 : index
    %c0_44 = arith.constant 0 : index
    %194 = vector.load %arg10[%c0_43, %c0_44] : memref<1x128xf32, #tpu.memory_space<vmem>>, vector<1x128xf32>
    %195 = vector.broadcast %194 : vector<1x128xf32> to vector<8x128xf32>
    %196 = arith.addf %193, %195 : vector<8x128xf32>
    %c0_45 = arith.constant 0 : index
    %c0_46 = arith.constant 0 : index
    %197 = vector.load %arg11[%c0_45, %c0_46] : memref<8x128xf32, #tpu.memory_space<vmem>>, vector<8x128xf32>
    tpu.vector_store %arg11[%c0_45, %c0_46], %196 {strides = array<i32>} : memref<8x128xf32, #tpu.memory_space<vmem>>, vector<8x128xf32>,
    return
  }
}

</mosaic_0001>

<bundles_post_ra>
// kernel: fingerspelling_forward.1
= control target key start
LH: loop header
LB: loop body
LE: loop exit
PB: predicated region body
PF: predicated region fallthrough
CT: control target
= control target key end

     0   :  { %vm82_vm0 = vcmask 130048   ;;  %v1384_v1 = vmov 0.0   ;;  %vm1385_vm1 = vmmov 0   ;;  %v1386_v10 = vmov 0   ;;  %s1388_s13 = smov 32   ;;  %s1389_s18 = smov 96   ;;  %s1671_s1 = inlined_call_operand.vmem [shape: bf16[16,128], index: 1, kind: input, shape index: {}]   ;;  %s1672_s0 = inlined_call_operand.vmem [shape: bf16[64,16], index: 0, kind: input, shape index: {}]   ;;  %s1673_s2 = inlined_call_operand.vmem [shape: bf16[32,128], index: 2, kind: input, shape index: {}]   ;;  %s1674_s3 = inlined_call_operand.vmem [shape: f32[1,128], index: 3, kind: input, shape index: {}]   ;;  %s1675_s4 = inlined_call_operand.vmem [shape: bf16[16,128], index: 4, kind: input, shape index: {}]   ;;  %s1676_s5 = inlined_call_operand.vmem [shape: f32[1,128], index: 5, kind: input, shape index: {}]   ;;  %s1677_s7 = inlined_call_operand.vmem [shape: bf16[32,128], index: 7, kind: input, shape index: {}]   ;;  %s1678_s6 = inlined_call_operand.vmem [shape: bf16[32,128], index: 6, kind: input, shape index: {}]   ;;  %s1679_s9 = inlined_call_operand.vmem [shape: bf16[128,128], index: 9, kind: input, shape index: {}]   ;;  %s1680_s8 = inlined_call_operand.vmem [shape: f32[1,128], index: 8, kind: input, shape index: {}]   ;;  %s1681_s10 = inlined_call_operand.vmem [shape: f32[1,128], index: 10, kind: input, shape index: {}]   ;;  %s1682_s11 = inlined_call_operand.vmem [shape: f32[8,128], index: 11, kind: output, shape index: {}]  }
   0x1   :  { %v1292_v0 = vld [vmem:[%s1671_s1] sm:$0xff]   ;;  %1204 = vmatprep.subr.bf16.mxu1 %v1384_v1  ;;  %1208 = vmatprep.mubr.msk.bf16.mxu1 %vm1385_vm1, %v1384_v1  ;;  %v1294_v3 = vld [vmem:[%s1672_s0 + $0x8] sm:$0xff]   ;;  %v1296_v5 = vld [vmem:[%s1672_s0 + $0x10] sm:$0xff]   ;;  %vm176_vm2 = vcmask 261120  }
   0x2   :  { %v1293_v2 = vld [vmem:[%s1672_s0] sm:$0xff]   ;;  %1170 = vmatprep.subr.bf16.mxu0 %v1292_v0  ;;  %v45_v6 = vld [vmem:[%s1672_s0 + $0x18] sm:$0xf]  ;;  %v1483_v7 = vld [vmem:[%s1672_s0 + $0x1c] sm:$0xf] }
   0x3   :  { %1171 = vmatpush3.bf16.msra.mxu0 %v1292_v0  ;;  %1172 = vmatprep.mubr.msk.bf16.mxu0 %vm82_vm0, %v1293_v2  ;;  %v1466_v4 = vld [vmem:[%s1673_s2] sm:$0xff]   ;;  %v1488_v8 = vld [vmem:[%s1673_s2 + $0x8] sm:$0xff]   ;;  %v1081_v9 = vcombine.low %v45_v6, %v1483_v7 }
   0x4   :  { %1180 = vmatprep.subr.bf16.mxu0 %v1384_v1  ;;  %1205 = vmatpush3.bf16.msra.mxu1 %v1466_v4  ;;  %v1077_v11 = vld [vmem:[%s1674_s3] ss:$0 sm:$0xff]  ;;  %s1387_s3 = smov 64  }
   0x5   :  { %1206 = vmatprep.subr.bf16.mxu1 %v1384_v1 }
   0x6   :  { %1173 = vmatmul.mubr.msk.bf16.vlgmr.msra.gmra.mrb[0].mxu0 %vm82_vm0, %v1294_v3 }
   0x7   :  { %1181 = vmatpush3.bf16.msra.mxu0 %v1466_v4  ;;  %1176 = vmatprep.mubr.msk.bf16.mxu0 %vm82_vm0, %v1296_v5 }
   0x8   :  { %1182 = vmatprep.subr.bf16.mxu0 %v1384_v1  ;;  %1207 = vmatpush3.bf16.msra.mxu1 %v1488_v8 }
   0x9   :  { %1220 = vmatprep.subr.bf16.mxu1 %v1384_v1 }
   0xb   :  { %1183 = vmatpush3.bf16.msra.mxu0 %v1488_v8 }
   0xc   :  { %1188 = vmatprep.subr.bf16.mxu0 %v1384_v1 }
   0xe   :  { %1177 = vmatmul.mubr.msk.bf16.gmra.mrb[4].mxu0 %vm82_vm0, %v1081_v9 }
   0xf   :  { %1184 = vmatprep.mubr.msk.bf16.mxu0 %vm1385_vm1, %v1384_v1 }
  0x16   :  { %1185 = vmatmul.mubr.bf16.vlgmr.msra.gmra.mrb[8].mxu0 %v1386_v10 }
  0x17   :  { %1189 = vmatpush3.bf16.msra.mxu0 %v1466_v4  ;;  %1192 = vmatprep.mubr.msk.bf16.mxu0 %vm1385_vm1, %v1384_v1 }
  0x18   :  { %1190 = vmatprep.subr.bf16.mxu0 %v1384_v1 }
  0x1b   :  { %1191 = vmatpush3.bf16.msra.mxu0 %v1488_v8 }
  0x1c   :  { %1196 = vmatprep.subr.bf16.mxu0 %v1384_v1 }
  0xd9   :  { %v1174_v12 = vpop.f32.mrb[0].mxu0 }
  0xda   :  { %v1508_v13 = vadd.f32 %v1174_v12, %v1077_v11  ;;  %v129_v14 = vpop.f32.mrb[1].mxu0 }
  0xdb   :  { %v1175_v15 = vpop.f32.mrb[2].mxu0  ;;  %v130_v27 = vadd.f32 %v1077_v11, %v129_v14 }
  0xdc   :  { %v1510_v16 = vadd.f32 %v1175_v15, %v1077_v11  ;;  %v132_v17 = vpop.f32.mrb[3].mxu0 }
  0xdd   :  { %v133_v18 = vadd.f32 %v1077_v11, %v132_v17 }
  0xe1   :  { %v1178_v19 = vpop.f32.mrb[4].mxu0 }
  0xe2   :  { %v1512_v20 = vadd.f32 %v1178_v19, %v1077_v11  ;;  %v145_v21 = vpop.f32.mrb[5].mxu0 }
  0xe3   :  { %v1514_v22 = vadd.f32 %v1077_v11, %v145_v21  ;;  %v1179_v23 = vpop.f32.mrb[6].mxu0 }
  0xe4   :  { %v1516_v24 = vadd.f32 %v1179_v23, %v1077_v11  ;;  %v148_v25 = vpop.f32.mrb[7].mxu0 }
  0xe5   :  { %v1518_v26 = vadd.f32 %v1077_v11, %v148_v25 }
  0xe9   :  { %v214_v28 = vpop.f32.mrb[8].mxu0 }
  0xea   :  { %v220_v29 = vadd.f32 %v214_v28, %v130_v27  ;;  %v1186_v30 = vpop.f32.mrb[9].mxu0 }
  0xeb   :  { %v217_v31 = vpop.f32.mrb[10].mxu0 }
  0xec   :  { %1312 = vtanh.f32 %v220_v29  ;;  %v1187_v32 = vpop.f32.mrb[11].mxu0  ;;  %v1089_v34 = vmul.f32 -1.442695, %v220_v29 }
  0xee   :  { %1314 = vpow2.f32 %v1089_v34 }
  0xf6   :  { %v1313_v33 = vpop.eup %1312 }
  0xf7   :  { %230 = vrot.lane.b32.xlu0 %v1313_v33, %s1387_s3 }
  0xf8   :  { %v1315_v35 = vpop.eup %1314 }
  0xf9   :  { %v224_v36 = vadd.f32 1.0, %v1315_v35 }
  0xfb   :  { %1316 = vrcp.f32 %v224_v36 }
 0x105   :  { %v1317_v37 = vpop.eup %1316 }
 0x106   :  { %v228_v40 = vmul.f32 0.0, %v1317_v37 }
 0x169   :  { %v231_v38 = vpop.permute.xlu0 %230 }
 0x16a   :  { %v233_v39 = vmul.f32 %v1317_v37, %v231_v38 }
 0x16c   :  { %235 = vrot.lane.b32.xlu0 %v233_v39, %s1388_s13 }
 0x1de   :  { %v236_v41 = vpop.permute.xlu0 %235 }
 0x1df   :  { %v238_v42 = vadd.f32 %v236_v41, %v228_v40 }
 0x1e1   :  { %1318 = vtanh.f32 %v238_v42 }
 0x1eb   :  { %v1319_v43 = vpop.eup %1318 }
 0x1ec   :  { %241 = vrot.lane.b32.xlu1 %v1319_v43, %s1387_s3 }
 0x25e   :  { %v242_v44 = vpop.permute.xlu1 %241 }
 0x25f   :  { %v244_v45 = vmul.f32 %v1317_v37, %v242_v44 }
 0x261   :  { %v245_v46 = vpack.c.bf16 %v244_v45, %v244_v45 }
 0x263   :  { %247 = vrot.lane.b32.xlu1 %v245_v46, %s1388_s13 }
 0x2d5   :  { %v248_v47 = vpop.permute.xlu1 %247 }
 0x2d6   :  { %1193 = vmatmul.mubr.msk.bf16.vlgmr.msra.gmra.mrb[12].mxu0 %vm176_vm2, %v248_v47 }
 0x2d7   :  { %1197 = vmatpush3.bf16.msra.mxu0 %v1466_v4  ;;  %1200 = vmatprep.mubr.msk.bf16.mxu0 %vm1385_vm1, %v1384_v1 }
 0x2d8   :  { %1198 = vmatprep.subr.bf16.mxu0 %v1384_v1 }
 0x2db   :  { %1199 = vmatpush3.bf16.msra.mxu0 %v1488_v8 }
 0x2dc   :  { %1212 = vmatprep.subr.bf16.mxu0 %v1384_v1 }
 0x3a9   :  { %v286_v48 = vpop.f32.mrb[12].mxu0 }
 0x3aa   :  { %v292_v49 = vadd.f32 %v286_v48, %v133_v18  ;;  %v1194_v50 = vpop.f32.mrb[13].mxu0 }
 0x3ab   :  { %v289_v51 = vpop.f32.mrb[14].mxu0 }
 0x3ac   :  { %1320 = vtanh.f32 %v292_v49  ;;  %v1195_v52 = vpop.f32.mrb[15].mxu0  ;;  %v1091_v54 = vmul.f32 -1.442695, %v292_v49 }
 0x3ae   :  { %1322 = vpow2.f32 %v1091_v54 }
 0x3b6   :  { %v1321_v53 = vpop.eup %1320 }
 0x3b7   :  { %302 = vrot.lane.b32.xlu0 %v1321_v53, %s1387_s3 }
 0x3b8   :  { %v1323_v55 = vpop.eup %1322 }
 0x3b9   :  { %v296_v56 = vadd.f32 1.0, %v1323_v55 }
 0x3bb   :  { %1324 = vrcp.f32 %v296_v56 }
 0x3c5   :  { %v1325_v57 = vpop.eup %1324 }
 0x3c6   :  { %v300_v60 = vmul.f32 %v1325_v57, %v238_v42 }
 0x429   :  { %v303_v58 = vpop.permute.xlu0 %302 }
 0x42a   :  { %v305_v59 = vmul.f32 %v1325_v57, %v303_v58 }
 0x42c   :  { %307 = vrot.lane.b32.xlu1 %v305_v59, %s1388_s13 }
 0x49e   :  { %v308_v61 = vpop.permute.xlu1 %307 }
 0x49f   :  { %v310_v62 = vadd.f32 %v308_v61, %v300_v60 }
 0x4a1   :  { %1326 = vtanh.f32 %v310_v62 }
 0x4ab   :  { %v1327_v63 = vpop.eup %1326 }
 0x4ac   :  { %313 = vrot.lane.b32.xlu0 %v1327_v63, %s1387_s3 }
 0x51e   :  { %v314_v0 = vpop.permute.xlu0 %313 }
 0x51f   :  { %v316_v2 = vmul.f32 %v1325_v57, %v314_v0 }
 0x521   :  { %v317_v3 = vpack.c.bf16 %v316_v2, %v316_v2 }
 0x523   :  { %319 = vrot.lane.b32.xlu1 %v317_v3, %s1388_s13 }
 0x595   :  { %v320_v5 = vpop.permute.xlu1 %319 }
 0x596   :  { %1201 = vmatmul.mubr.msk.bf16.vlgmr.msra.gmra.mrb[16].mxu0 %vm176_vm2, %v320_v5 }
 0x597   :  { %1213 = vmatpush3.bf16.msra.mxu0 %v1466_v4  ;;  %1216 = vmatprep.mubr.msk.bf16.mxu0 %vm1385_vm1, %v1384_v1 }
 0x598   :  { %1214 = vmatprep.subr.bf16.mxu0 %v1384_v1 }
 0x59b   :  { %1215 = vmatpush3.bf16.msra.mxu0 %v1488_v8 }
 0x59c   :  { %1228 = vmatprep.subr.bf16.mxu0 %v1384_v1 }
 0x669   :  { %v358_v6 = vpop.f32.mrb[16].mxu0 }
 0x66a   :  { %v364_v9 = vadd.f32 %v358_v6, %v1508_v13  ;;  %v1202_v10 = vpop.f32.mrb[17].mxu0 }
 0x66b   :  { %v361_v11 = vpop.f32.mrb[18].mxu0 }
 0x66c   :  { %1328 = vtanh.f32 %v364_v9  ;;  %v1203_v12 = vpop.f32.mrb[19].mxu0  ;;  %v1093_v15 = vmul.f32 -1.442695, %v364_v9 }
 0x66e   :  { %1330 = vpow2.f32 %v1093_v15 }
 0x676   :  { %v1329_v14 = vpop.eup %1328 }
 0x677   :  { %374 = vrot.lane.b32.xlu0 %v1329_v14, %s1387_s3 }
 0x678   :  { %v1331_v17 = vpop.eup %1330 }
 0x679   :  { %v368_v18 = vadd.f32 1.0, %v1331_v17 }
 0x67b   :  { %1332 = vrcp.f32 %v368_v18 }
 0x685   :  { %v1333_v19 = vpop.eup %1332 }
 0x686   :  { %v372_v25 = vmul.f32 %v1333_v19, %v310_v62 }
 0x6e9   :  { %v375_v21 = vpop.permute.xlu0 %374 }
 0x6ea   :  { %v377_v23 = vmul.f32 %v1333_v19, %v375_v21 }
 0x6ec   :  { %379 = vrot.lane.b32.xlu1 %v377_v23, %s1388_s13 }
 0x75e   :  { %v380_v27 = vpop.permute.xlu1 %379 }
 0x75f   :  { %v382_v13 = vadd.f32 %v380_v27, %v372_v25 }
 0x761   :  { %1334 = vtanh.f32 %v382_v13 }
 0x76b   :  { %v1335_v28 = vpop.eup %1334 }
 0x76c   :  { %385 = vrot.lane.b32.xlu0 %v1335_v28, %s1387_s3 }
 0x7de   :  { %v386_v29 = vpop.permute.xlu0 %385 }
 0x7df   :  { %v388_v30 = vmul.f32 %v1333_v19, %v386_v29 }
 0x7e1   :  { %v389_v31 = vpack.c.bf16 %v388_v30, %v388_v30 }
 0x7e3   :  { %391 = vrot.lane.b32.xlu1 %v389_v31, %s1388_s13 }
 0x855   :  { %v392_v32 = vpop.permute.xlu1 %391 }
 0x856   :  { %1209 = vmatmul.mubr.msk.bf16.vlgmr.msra.gmra.mrb[0].mxu1 %vm176_vm2, %v392_v32 }
 0x857   :  { %1221 = vmatpush3.bf16.msra.mxu1 %v1466_v4  ;;  %1224 = vmatprep.mubr.msk.bf16.mxu1 %vm1385_vm1, %v1384_v1 }
 0x858   :  { %1222 = vmatprep.subr.bf16.mxu1 %v1384_v1 }
 0x85b   :  { %1223 = vmatpush3.bf16.msra.mxu1 %v1488_v8 }
 0x85c   :  { %1236 = vmatprep.subr.bf16.mxu1 %v1384_v1 }
 0x929   :  { %v430_v33 = vpop.f32.mrb[0].mxu1 }
 0x92a   :  { %v436_v34 = vadd.f32 %v430_v33, %v1510_v16  ;;  %v1210_v35 = vpop.f32.mrb[1].mxu1 }
 0x92b   :  { %v433_v36 = vpop.f32.mrb[2].mxu1 }
 0x92c   :  { %1336 = vtanh.f32 %v436_v34  ;;  %v1211_v37 = vpop.f32.mrb[3].mxu1  ;;  %v1095_v39 = vmul.f32 -1.442695, %v436_v34 }
 0x92e   :  { %1338 = vpow2.f32 %v1095_v39 }
 0x936   :  { %v1337_v38 = vpop.eup %1336 }
 0x937   :  { %446 = vrot.lane.b32.xlu0 %v1337_v38, %s1387_s3 }
 0x938   :  { %v1339_v40 = vpop.eup %1338 }
 0x939   :  { %v440_v41 = vadd.f32 1.0, %v1339_v40 }
 0x93b   :  { %1340 = vrcp.f32 %v440_v41 }
 0x945   :  { %v1341_v42 = vpop.eup %1340 }
 0x946   :  { %v444_v45 = vmul.f32 %v1341_v42, %v382_v13 }
 0x9a9   :  { %v447_v43 = vpop.permute.xlu0 %446 }
 0x9aa   :  { %v449_v44 = vmul.f32 %v1341_v42, %v447_v43 }
 0x9ac   :  { %451 = vrot.lane.b32.xlu1 %v449_v44, %s1388_s13 }
 0xa1e   :  { %v452_v46 = vpop.permute.xlu1 %451 }
 0xa1f   :  { %v454_v16 = vadd.f32 %v452_v46, %v444_v45 }
 0xa21   :  { %1342 = vtanh.f32 %v454_v16 }
 0xa2b   :  { %v1343_v47 = vpop.eup %1342 }
 0xa2c   :  { %457 = vrot.lane.b32.xlu0 %v1343_v47, %s1387_s3  ;;  %v1299_v47 = vld [vmem:[%s1675_s4] sm:$0xff]  }
 0xa9e   :  { %v458_v48 = vpop.permute.xlu0 %457 }
 0xa9f   :  { %v460_v49 = vmul.f32 %v1341_v42, %v458_v48 }
 0xaa1   :  { %v461_v50 = vpack.c.bf16 %v460_v49, %v460_v49 }
 0xaa3   :  { %463 = vrot.lane.b32.xlu1 %v461_v50, %s1388_s13 }
 0xb15   :  { %v464_v51 = vpop.permute.xlu1 %463 }
 0xb16   :  { %1217 = vmatmul.mubr.msk.bf16.vlgmr.msra.gmra.mrb[20].mxu0 %vm176_vm2, %v464_v51 }
 0xb17   :  { %1229 = vmatpush3.bf16.msra.mxu0 %v1466_v4  ;;  %1232 = vmatprep.mubr.msk.bf16.mxu0 %vm1385_vm1, %v1384_v1 }
 0xb18   :  { %1230 = vmatprep.subr.bf16.mxu0 %v1384_v1 }
 0xb1b   :  { %1231 = vmatpush3.bf16.msra.mxu0 %v1488_v8 }
 0xb1c   :  { %1244 = vmatprep.subr.bf16.mxu0 %v1384_v1 }
 0xbe9   :  { %v502_v52 = vpop.f32.mrb[20].mxu0 }
 0xbea   :  { %v508_v53 = vadd.f32 %v502_v52, %v1514_v22  ;;  %v1218_v54 = vpop.f32.mrb[21].mxu0 }
 0xbeb   :  { %v505_v55 = vpop.f32.mrb[22].mxu0 }
 0xbec   :  { %1344 = vtanh.f32 %v508_v53  ;;  %v1219_v56 = vpop.f32.mrb[23].mxu0  ;;  %v1097_v58 = vmul.f32 -1.442695, %v508_v53 }
 0xbee   :  { %1346 = vpow2.f32 %v1097_v58 }
 0xbf6   :  { %v1345_v57 = vpop.eup %1344 }
 0xbf7   :  { %518 = vrot.lane.b32.xlu0 %v1345_v57, %s1387_s3 }
 0xbf8   :  { %v1347_v59 = vpop.eup %1346 }
 0xbf9   :  { %v512_v60 = vadd.f32 1.0, %v1347_v59 }
 0xbfb   :  { %1348 = vrcp.f32 %v512_v60 }
 0xc05   :  { %v1349_v61 = vpop.eup %1348 }
 0xc06   :  { %v516_v0 = vmul.f32 %v1349_v61, %v454_v16 }
 0xc69   :  { %v519_v62 = vpop.permute.xlu0 %518 }
 0xc6a   :  { %v521_v63 = vmul.f32 %v1349_v61, %v519_v62 }
 0xc6c   :  { %523 = vrot.lane.b32.xlu1 %v521_v63, %s1388_s13 }
 0xcde   :  { %v524_v2 = vpop.permute.xlu1 %523 }
 0xcdf   :  { %v526_v22 = vadd.f32 %v524_v2, %v516_v0 }
 0xce1   :  { %1350 = vtanh.f32 %v526_v22 }
 0xceb   :  { %v1351_v3 = vpop.eup %1350 }
 0xcec   :  { %529 = vrot.lane.b32.xlu0 %v1351_v3, %s1387_s3 }
 0xd5e   :  { %v530_v5 = vpop.permute.xlu0 %529 }
 0xd5f   :  { %v532_v6 = vmul.f32 %v1349_v61, %v530_v5 }
 0xd61   :  { %v533_v9 = vpack.c.bf16 %v532_v6, %v532_v6 }
 0xd63   :  { %535 = vrot.lane.b32.xlu1 %v533_v9, %s1388_s13 }
 0xdd5   :  { %v536_v10 = vpop.permute.xlu1 %535 }
 0xdd6   :  { %1225 = vmatmul.mubr.msk.bf16.vlgmr.msra.gmra.mrb[4].mxu1 %vm176_vm2, %v536_v10 }
 0xdd7   :  { %1237 = vmatpush3.bf16.msra.mxu1 %v1466_v4  ;;  %1240 = vmatprep.mubr.msk.bf16.mxu1 %vm1385_vm1, %v1384_v1 }
 0xdd8   :  { %1238 = vmatprep.subr.bf16.mxu1 %v1384_v1 }
 0xddb   :  { %1239 = vmatpush3.bf16.msra.mxu1 %v1488_v8 }
 0xddc   :  { %1250 = vmatprep.subr.bf16.mxu1 %v1384_v1 }
 0xea9   :  { %v574_v11 = vpop.f32.mrb[4].mxu1 }
 0xeaa   :  { %v580_v12 = vadd.f32 %v574_v11, %v1518_v26  ;;  %v1226_v14 = vpop.f32.mrb[5].mxu1 }
 0xeab   :  { %v577_v15 = vpop.f32.mrb[6].mxu1 }
 0xeac   :  { %1352 = vtanh.f32 %v580_v12  ;;  %v1227_v17 = vpop.f32.mrb[7].mxu1  ;;  %v1099_v4 = vmul.f32 -1.442695, %v580_v12  ;;  %v1300_v15 = vld [vmem:[%s1677_s7] sm:$0xff]  }
 0xeae   :  { %1354 = vpow2.f32 %v1099_v4 }
 0xeb6   :  { %v1353_v18 = vpop.eup %1352 }
 0xeb7   :  { %590 = vrot.lane.b32.xlu0 %v1353_v18, %s1387_s3 }
 0xeb8   :  { %v1355_v19 = vpop.eup %1354 }
 0xeb9   :  { %v584_v21 = vadd.f32 1.0, %v1355_v19 }
 0xebb   :  { %1356 = vrcp.f32 %v584_v21  ;;  %v1301_v21 = vld [vmem:[%s1677_s7 + $0x8] sm:$0xff]  }
 0xec5   :  { %v1357_v23 = vpop.eup %1356 }
 0xec6   :  { %v588_v27 = vmul.f32 %v1357_v23, %v526_v22 }
 0xf29   :  { %v591_v25 = vpop.permute.xlu0 %590 }
 0xf2a   :  { %v593_v8 = vmul.f32 %v1357_v23, %v591_v25  ;;  %v1303_v25 = vld [vmem:[%s1678_s6 + $0x8] sm:$0xff]  }
 0xf2c   :  { %595 = vrot.lane.b32.xlu1 %v593_v8, %s1388_s13 }
 0xf9e   :  { %v596_v13 = vpop.permute.xlu1 %595 }
 0xf9f   :  { %v598_v26 = vadd.f32 %v596_v13, %v588_v27 }
 0xfa1   :  { %1358 = vtanh.f32 %v598_v26 }
 0xfab   :  { %v1359_v28 = vpop.eup %1358 }
 0xfac   :  { %601 = vrot.lane.b32.xlu0 %v1359_v28, %s1387_s3 }
0x101e   :  { %v602_v29 = vpop.permute.xlu0 %601 }
0x101f   :  { %v604_v30 = vmul.f32 %v1357_v23, %v602_v29  ;;  %v1302_v23 = vld [vmem:[%s1678_s6] sm:$0xff]  }
0x1021   :  { %v605_v31 = vpack.c.bf16 %v604_v30, %v604_v30 }
0x1023   :  { %607 = vrot.lane.b32.xlu1 %v605_v31, %s1388_s13 }
0x1095   :  { %v608_v32 = vpop.permute.xlu1 %607 }
0x1096   :  { %1233 = vmatmul.mubr.msk.bf16.vlgmr.msra.gmra.mrb[24].mxu0 %vm176_vm2, %v608_v32  ;;  %v1304_v32 = vld [vmem:[%s1679_s9] sm:$0xff]  }
0x1097   :  { %1246 = vmatprep.mubr.msk.bf16.mxu0 %vm1385_vm1, %v1384_v1  ;;  %1245 = vmatpush3.bf16.msra.mxu0 %v1299_v47 }
0x1098   :  { %1258 = vmatprep.subr.bf16.mxu0 %v1384_v1 }
0x109e   :  { %1247 = vmatmul.mubr.msk.bf16.vlgmr.msra.gmra.mrb[28].mxu0 %vm82_vm0, %v1483_v7  ;;  %v1104_v7 = vld [vmem:[%s1676_s5] ss:$0 sm:$0xff] }
0x109f   :  { %1262 = vmatprep.mubr.msk.bf16.mxu0 %vm1385_vm1, %v1384_v1  ;;  %1259 = vmatpush3.bf16.msra.mxu0 %v1302_v23 }
0x10a0   :  { %1260 = vmatprep.subr.bf16.mxu0 %v1384_v1 }
0x10a3   :  { %1261 = vmatpush3.bf16.msra.mxu0 %v1303_v25 }
0x1169   :  { %v646_v33 = vpop.f32.mrb[24].mxu0 }
0x116a   :  { %v652_v34 = vadd.f32 %v646_v33, %v1512_v20  ;;  %v1234_v35 = vpop.f32.mrb[25].mxu0  ;;  %v1305_v33 = vld [vmem:[%s1679_s9 + $0x8] sm:$0xff]  }
0x116b   :  { %v649_v36 = vpop.f32.mrb[26].mxu0  ;;  %v1307_v35 = vld [vmem:[%s1679_s9 + $0x18] sm:$0xff]  }
0x116c   :  { %1360 = vtanh.f32 %v652_v34  ;;  %v1235_v37 = vpop.f32.mrb[27].mxu0  ;;  %v1101_v39 = vmul.f32 -1.442695, %v652_v34  ;;  %v1306_v34 = vld [vmem:[%s1679_s9 + $0x10] sm:$0xff]   ;;  %v1308_v36 = vld [vmem:[%s1679_s9 + $0x20] sm:$0xff]  }
0x116d   :  { %v1309_v37 = vld [vmem:[%s1679_s9 + $0x28] sm:$0xff]  }
0x116e   :  { %1362 = vpow2.f32 %v1101_v39  ;;  %v1310_v39 = vld [vmem:[%s1679_s9 + $0x30] sm:$0xff]  }
0x1171   :  { %v801_v52 = vpop.f32.mrb[28].mxu0 }
0x1172   :  { %v1248_v53 = vpop.f32.mrb[29].mxu0  ;;  %v802_v59 = vadd.f32 %v1104_v7, %v801_v52 }
0x1173   :  { %v804_v54 = vpop.f32.mrb[30].mxu0 }
0x1174   :  { %v1249_v55 = vpop.f32.mrb[31].mxu0  ;;  %v1107_v2 = vmul.f32 -1.442695, %v802_v59 }
0x1176   :  { %v1361_v38 = vpop.eup %1360 }
0x1177   :  { %662 = vrot.lane.b32.xlu0 %v1361_v38, %s1387_s3 }
0x1178   :  { %v1363_v40 = vpop.eup %1362 }
0x1179   :  { %v656_v41 = vadd.f32 1.0, %v1363_v40  ;;  %v1311_v40 = vld [vmem:[%s1679_s9 + $0x38] sm:$0xff]  }
0x117b   :  { %1364 = vrcp.f32 %v656_v41 }
0x1185   :  { %v1365_v42 = vpop.eup %1364 }
0x1186   :  { %v660_v45 = vmul.f32 %v1365_v42, %v598_v26 }
0x11e9   :  { %v663_v43 = vpop.permute.xlu0 %662 }
0x11ea   :  { %v665_v44 = vmul.f32 %v1365_v42, %v663_v43 }
0x11ec   :  { %667 = vrot.lane.b32.xlu1 %v665_v44, %s1388_s13 }
0x125e   :  { %v668_v46 = vpop.permute.xlu1 %667 }
0x125f   :  { %v670_v20 = vadd.f32 %v668_v46, %v660_v45  ;;  %v1114_v46 = vld [vmem:[%s1680_s8] ss:$0 sm:$0xff] }
0x1261   :  { %1366 = vtanh.f32 %v670_v20 }
0x126b   :  { %v1367_v16 = vpop.eup %1366 }
0x126c   :  { %673 = vrot.lane.b32.xlu0 %v1367_v16, %s1387_s3 }
0x12de   :  { %v674_v48 = vpop.permute.xlu0 %673 }
0x12df   :  { %v676_v49 = vmul.f32 %v1365_v42, %v674_v48 }
0x12e1   :  { %v677_v50 = vpack.c.bf16 %v676_v49, %v676_v49 }
0x12e3   :  { %679 = vrot.lane.b32.xlu1 %v677_v50, %s1388_s13 }
0x1355   :  { %v680_v51 = vpop.permute.xlu1 %679 }
0x1356   :  { %1241 = vmatmul.mubr.msk.bf16.vlgmr.msra.gmra.mrb[8].mxu1 %vm176_vm2, %v680_v51  ;;  %v1115_v51 = vld [vmem:[%s1681_s10] ss:$0 sm:$0xff] }
0x1357   :  { %1254 = vmatprep.mubr.msk.bf16.mxu1 %vm1385_vm1, %v1384_v1  ;;  %1251 = vmatpush3.bf16.msra.mxu1 %v1300_v15 }
0x1358   :  { %1252 = vmatprep.subr.bf16.mxu1 %v1384_v1 }
0x135b   :  { %1253 = vmatpush3.bf16.msra.mxu1 %v1301_v21 }
0x135c   :  { %1266 = vmatprep.subr.bf16.mxu1 %v1384_v1 }
0x1429   :  { %v718_v56 = vpop.f32.mrb[8].mxu1 }
0x142a   :  { %v724_v57 = vadd.f32 %v718_v56, %v1516_v24  ;;  %v1242_v58 = vpop.f32.mrb[9].mxu1 }
0x142b   :  { %v721_v60 = vpop.f32.mrb[10].mxu1 }
0x142c   :  { %1368 = vtanh.f32 %v724_v57  ;;  %v1243_v61 = vpop.f32.mrb[11].mxu1  ;;  %v1103_v0 = vmul.f32 -1.442695, %v724_v57 }
0x142d   :  { %1370 = vtanh.f32 %v802_v59 }
0x142e   :  { %1372 = vpow2.f32 %v1103_v0 }
0x142f   :  { %1374 = vpow2.f32 %v1107_v2 }
0x1436   :  { %v1369_v62 = vpop.eup %1368 }
0x1437   :  { %734 = vrot.lane.b32.xlu0 %v1369_v62, %s1387_s3  ;;  %v1371_v63 = vpop.eup %1370 }
0x1438   :  { %v1373_v22 = vpop.eup %1372 }
0x1439   :  { %v1375_v3 = vpop.eup %1374  ;;  %v728_v5 = vadd.f32 1.0, %v1373_v22 }
0x143a   :  { %v810_v24 = vadd.f32 1.0, %v1375_v3 }
0x143b   :  { %815 = vrot.lane.b32.xlu0 %v1371_v63, %s1387_s3  ;;  %1376 = vrcp.f32 %v728_v5 }
0x143c   :  { %1378 = vrcp.f32 %v810_v24 }
0x1445   :  { %v1377_v6 = vpop.eup %1376 }
0x1446   :  { %v1379_v11 = vpop.eup %1378  ;;  %v732_v18 = vmul.f32 %v1377_v6, %v670_v20 }
0x14a9   :  { %v735_v9 = vpop.permute.xlu0 %734 }
0x14aa   :  { %v737_v10 = vmul.f32 %v1377_v6, %v735_v9 }
0x14ac   :  { %739 = vrot.lane.b32.xlu1 %v737_v10, %s1388_s13 }
0x14ad   :  { %v816_v12 = vpop.permute.xlu0 %815 }
0x14ae   :  { %v818_v14 = vmul.f32 %v1379_v11, %v816_v12 }
0x14b0   :  { %1380 = vtanh.f32 %v818_v14 }
0x14ba   :  { %v1381_v17 = vpop.eup %1380 }
0x14bb   :  { %821 = vrot.lane.b32.xlu0 %v1381_v17, %s1389_s18 }
0x151e   :  { %v740_v4 = vpop.permute.xlu1 %739 }
0x151f   :  { %v742_v19 = vadd.f32 %v740_v4, %v732_v18 }
0x1521   :  { %1382 = vtanh.f32 %v742_v19 }
0x152b   :  { %v1383_v8 = vpop.eup %1382 }
0x152c   :  { %745 = vrot.lane.b32.xlu1 %v1383_v8, %s1387_s3 }
0x152d   :  { %v822_v27 = vpop.permute.xlu0 %821 }
0x152e   :  { %v824_v13 = vmul.f32 %v1379_v11, %v822_v27 }
0x1530   :  { %v830_v26 = vpack.c.bf16 %v824_v13, %v824_v13 }
0x1532   :  { %836 = vrot.lane.b32.xlu1 %v830_v26, %s1388_s13 }
0x159e   :  { %v746_v28 = vpop.permute.xlu1 %745 }
0x159f   :  { %v748_v29 = vmul.f32 %v1377_v6, %v746_v28 }
0x15a1   :  { %v825_v30 = vpack.c.bf16 %v748_v29, %v748_v29 }
0x15a3   :  { %894 = vrot.lane.b32.xlu0 %v825_v30, %s1388_s13 }
0x15a4   :  { %v837_v31 = vpop.permute.xlu1 %836 }
0x15a5   :  { %1255 = vmatmul.mubr.msk.bf16.vlgmr.msra.gmra.mrb[12].mxu1 %vm176_vm2, %v837_v31 }
0x15a6   :  { %1282 = vmatprep.mubr.msk.bf16.mxu1 %vm1385_vm1, %v1384_v1  ;;  %1267 = vmatpush3.bf16.msra.mxu1 %v1304_v32 }
0x15a7   :  { %1268 = vmatprep.subr.bf16.mxu1 %v1384_v1 }
0x15aa   :  { %1269 = vmatpush3.bf16.msra.mxu1 %v1305_v33 }
0x15ab   :  { %1270 = vmatprep.subr.bf16.mxu1 %v1384_v1 }
0x15ae   :  { %1271 = vmatpush3.bf16.msra.mxu1 %v1306_v34 }
0x15af   :  { %1272 = vmatprep.subr.bf16.mxu1 %v1384_v1 }
0x15b2   :  { %1273 = vmatpush3.bf16.msra.mxu1 %v1307_v35 }
0x15b3   :  { %1274 = vmatprep.subr.bf16.mxu1 %v1384_v1 }
0x15b6   :  { %1275 = vmatpush3.bf16.msra.mxu1 %v1308_v36 }
0x15b7   :  { %1276 = vmatprep.subr.bf16.mxu1 %v1384_v1 }
0x15ba   :  { %1277 = vmatpush3.bf16.msra.mxu1 %v1309_v37 }
0x15bb   :  { %1278 = vmatprep.subr.bf16.mxu1 %v1384_v1 }
0x15be   :  { %1279 = vmatpush3.bf16.msra.mxu1 %v1310_v39 }
0x15bf   :  { %1280 = vmatprep.subr.bf16.mxu1 %v1384_v1 }
0x15c2   :  { %1281 = vmatpush3.bf16.msra.mxu1 %v1311_v40 }
0x1615   :  { %v895_v38 = vpop.permute.xlu0 %894 }
0x1616   :  { %1263 = vmatmul.mubr.msk.bf16.vlgmr.msra.gmra.mrb[32].mxu0 %vm176_vm2, %v895_v38 }
0x1678   :  { %v887_v41 = vpop.f32.mrb[12].mxu1 }
0x1679   :  { %v1256_v42 = vpop.f32.mrb[13].mxu1 }
0x167a   :  { %v890_v43 = vpop.f32.mrb[14].mxu1 }
0x167b   :  { %v1257_v44 = vpop.f32.mrb[15].mxu1 }
0x16e9   :  { %v945_v45 = vpop.f32.mrb[32].mxu0 }
0x16ea   :  { %v946_v20 = vadd.f32 %v945_v45, %v887_v41  ;;  %v1264_v16 = vpop.f32.mrb[33].mxu0 }
0x16eb   :  { %v948_v47 = vpop.f32.mrb[34].mxu0 }
0x16ec   :  { %v958_v48 = vadd.f32 %v1114_v46, %v946_v20  ;;  %v1265_v49 = vpop.f32.mrb[35].mxu0 }
0x16ee   :  { %v959_v1 = vmax.f32 %v958_v48, 0.0 }
0x16f0   :  { %v960_v50 = vpack.c.bf16 %v959_v1, %v959_v1 }
0x16f2   :  { %1283 = vmatmul.mubr.bf16.vlgmr.msra.gmra.mrb[16].mxu1 %v960_v50 }
0x17c5   :  { %v1066_v52 = vpop.f32.mrb[16].mxu1 }
0x17c6   :  { %v1067_v53 = vadd.f32 %v1115_v51, %v1066_v52  ;;  %v1284_v54 = vpop.f32.mrb[17].mxu1 }
0x17c7   :  { %v1069_v55 = vpop.f32.mrb[18].mxu1 }
0x17c8   :  { %1072 = vst [vmem:[%s1682_s11] sm:$0xff] %v1067_v53  ;;  %v1285_v7 = vpop.f32.mrb[19].mxu1 }

</bundles_post_ra>
